<compile_context>
chip_gen: v5e
topology: v5e:2x2
jax: 0.10.0
libtpu: 0.0.40
codegen_flags: <defaults>
</compile_context>

<pallas_src>
import functools
from typing import NamedTuple

import jax
import jax.numpy as jnp
import numpy as np
from jax.experimental import pallas as pl
from jax.experimental.pallas import tpu as pltpu

LANE = 128  # TPU vreg lane width; final output padded to a multiple of this.


class LayerCfg(NamedTuple):
    nd: int                # number of dst nodes of this block
    ns: int                # number of src nodes of this block
    din: int               # input feature dim (unpadded)
    dout: int              # output feature dim (unpadded)
    transform_first: bool  # apply W_neigh before aggregation (cheaper when Dout < Din)
    apply_relu: bool


def _plan_layers(blocks, params):
    """Static (trace-time) per-layer plan: shapes + matmul ordering + activation."""
    n_layers = len(params)
    cfgs = []
    for l, (adj, (w_self, w_neigh, _)) in enumerate(zip(blocks, params)):
        nd, ns = adj.shape
        din, dout = w_self.shape
        # FLOPs: aggregate-first (fused concat matmul) vs transform-first.
        flops_agg_first = nd * ns * din + nd * (2 * din) * dout
        flops_xform_first = ns * din * dout + nd * ns * dout + nd * din * dout
        cfgs.append(
            LayerCfg(
                nd=nd, ns=ns, din=din, dout=dout,
                transform_first=flops_xform_first < flops_agg_first,
                apply_relu=(l != n_layers - 1),
            )
        )
    return cfgs


def _sage_fused_kernel(*refs, cfgs):
    # refs = (x, <per-layer operands...>, out)
    #   aggregate-first layer : adj, w_cat,  bias          (3 refs)
    #   transform-first layer : adj, w_self, w_neigh, bias (4 refs)
    x_ref, out_ref = refs[0], refs[-1]
    layer_refs = iter(refs[1:-1])
    n_layers = len(cfgs)

    # Running activations kept in f32 between layers; cast to bf16 once per layer
    # right at the MXU inputs.
    h = x_ref[...].astype(jnp.float32)                    # [Ns_0, Din_0]

    for l, cfg in enumerate(cfgs):
        adj = next(layer_refs)[...]                       # bf16 [Nd, Ns]
        h_bf = h.astype(jnp.bfloat16)                     # single cast per layer

        if cfg.transform_first:
            w_self = next(layer_refs)[...]                # bf16 [Din, Dout_p]
            w_neigh = next(layer_refs)[...]               # bf16 [Din, Dout_p]
            bias = next(layer_refs)[...]                  # f32  [1,   Dout_p]
            # (A @ H) @ Wn  ->  A @ (H @ Wn): cheaper when Dout < Din.
            hw = jnp.dot(h_bf, w_neigh,
                         preferred_element_type=jnp.float32).astype(jnp.bfloat16)
            out = (
                jnp.dot(h_bf[: cfg.nd, :], w_self,
                        preferred_element_type=jnp.float32)
                + jnp.dot(adj, hw, preferred_element_type=jnp.float32)
                + bias
            )
        else:
            w_cat = next(layer_refs)[...]                 # bf16 [2*Din, Dout_p]
            bias = next(layer_refs)[...]                  # f32  [1,     Dout_p]
            # Mean aggregation, then ONE fused matmul: [H_dst | A@H] @ [W_self ; W_neigh].
            h_neigh = jnp.dot(adj, h_bf, preferred_element_type=jnp.float32)
            h_cat = jnp.concatenate([h[: cfg.nd, :], h_neigh],
                                    axis=1).astype(jnp.bfloat16)
            out = jnp.dot(h_cat, w_cat, preferred_element_type=jnp.float32) + bias

        if cfg.apply_relu:
            out = jnp.maximum(out, 0.0)

        if l == n_layers - 1:
            out_ref[...] = out.astype(out_ref.dtype)
        else:
            h = out  # stays VMEM/vreg-resident, feeds the next layer


def sage_forward(blocks, x, params):
    """Full SAGE forward: all SAGEConv('mean') layers fused into one Pallas kernel."""
    cfgs = _plan_layers(blocks, params)
    n_layers = len(cfgs)
    nd_last = cfgs[-1].nd
    n_classes = cfgs[-1].dout
    dout_pad = max(LANE * pl.cdiv(n_classes, LANE), LANE)   # lane-dense output store

    operands = [x.astype(jnp.bfloat16)]
    for l, (cfg, adj, (w_self, w_neigh, bias)) in enumerate(zip(cfgs, blocks, params)):
        ws, wn, b = w_self, w_neigh, bias.astype(jnp.float32)
        if l == n_layers - 1 and n_classes < dout_pad:
            # Zero-pad the classifier head so the output store is a full 128-lane slab.
            pad = dout_pad - n_classes
            ws = jnp.pad(ws, ((0, 0), (0, pad)))
            wn = jnp.pad(wn, ((0, 0), (0, pad)))
            b = jnp.pad(b, ((0, 0), (0, pad)))
        if cfg.transform_first:
            operands += [
                adj.astype(jnp.bfloat16),
                ws.astype(jnp.bfloat16),
                wn.astype(jnp.bfloat16),
                b,
            ]
        else:
            w_cat = jnp.concatenate([ws, wn], axis=0)      # [2*Din, Dout_p]
            operands += [
                adj.astype(jnp.bfloat16),
                w_cat.astype(jnp.bfloat16),
                b,
            ]

    # Every operand is 2-D and fully VMEM-resident (block == full array).
    in_specs = [pl.BlockSpec(op.shape, lambda i: (0, 0)) for op in operands]

    kernel = functools.partial(_sage_fused_kernel, cfgs=tuple(cfgs))
    out_padded = pl.pallas_call(
        kernel,
        out_shape=jax.ShapeDtypeStruct((nd_last, dout_pad), jnp.float32),
        grid=(1,),
        in_specs=in_specs,
        out_specs=pl.BlockSpec((nd_last, dout_pad), lambda i: (0, 0)),
        compiler_params=pltpu.CompilerParams(
            dimension_semantics=("arbitrary",),
        ),
    )(*operands)
    return out_padded[:, :n_classes]


def _reference_forward(blocks, x, params):
    """Pure-JAX reference mirroring the kernel's bf16-input / f32-accumulate math."""
    cfgs = _plan_layers(blocks, params)
    bf = lambda a: a.astype(jnp.bfloat16).astype(jnp.float32)
    h = bf(x)
    out = None
    for cfg, adj, (w_self, w_neigh, bias) in zip(cfgs, blocks, params):
        adj_, ws, wn = bf(adj), bf(w_self), bf(w_neigh)
        h_dst = h[: cfg.nd]
        if cfg.transform_first:
            hw = bf(h @ wn)
            out = h_dst @ ws + adj_ @ hw + bias
        else:
            h_neigh = bf(adj_ @ h)
            out = h_dst @ ws + h_neigh @ wn + bias
        if cfg.apply_relu:
            out = jnp.maximum(out, 0.0)
        h = bf(out)
    return out


def _make_block(key, n_dst, n_src):
    # random graph -> dense row-normalized mean adjacency (degree clamped >= 1, like DGL)
    mask = (jax.random.uniform(key, (n_dst, n_src)) < 0.3).astype(jnp.float32)
    deg = jnp.maximum(mask.sum(axis=1, keepdims=True), 1.0)
    return mask / deg


def _init_layer(key, din, dout):
    k1, k2, k3 = jax.random.split(key, 3)
    scale = 1.0 / np.sqrt(din)
    w_self = jax.random.uniform(k1, (din, dout), jnp.float32, -scale, scale)
    w_neigh = jax.random.uniform(k2, (din, dout), jnp.float32, -scale, scale)
    bias = jax.random.uniform(k3, (1, dout), jnp.float32, -scale, scale)
    return w_self, w_neigh, bias


if __name__ == "__main__":
    key = jax.random.PRNGKey(0)

    in_feats, n_hidden, n_classes, n_layers = 16, 32, 8, 3
    # node counts per hop: src of layer l = counts[l], dst of layer l = counts[l+1]
    counts = [64, 32, 16, 8]

    k_x, k_b, k_p = jax.random.split(key, 3)
    x = jax.random.normal(k_x, (counts[0], in_feats), jnp.float32)

    block_keys = jax.random.split(k_b, n_layers)
    blocks = [
        _make_block(block_keys[l], counts[l + 1], counts[l]) for l in range(n_layers)
    ]

    dims = [in_feats] + [n_hidden] * (n_layers - 1) + [n_classes]
    param_keys = jax.random.split(k_p, n_layers)
    params = [
        _init_layer(param_keys[l], dims[l], dims[l + 1]) for l in range(n_layers)
    ]

    out = jax.block_until_ready(sage_forward(blocks, x, params))
    ref = jax.block_until_ready(_reference_forward(blocks, x, params))

    np.testing.assert_allclose(np.asarray(out), np.asarray(ref), rtol=2e-3, atol=2e-3)
    print("KERNEL_OK")
</pallas_src>

<mosaic_0001>
module attributes {stable_mosaic.version = 11 : i64} {
  func.func @_sage_fused_kernel(%arg0: i32, %arg1: memref<64x16xbf16, #tpu.memory_space<vmem>>, %arg2: memref<32x64xbf16, #tpu.memory_space<vmem>>, %arg3: memref<32x32xbf16, #tpu.memory_space<vmem>>, %arg4: memref<1x32xf32, #tpu.memory_space<vmem>>, %arg5: memref<16x32xbf16, #tpu.memory_space<vmem>>, %arg6: memref<64x32xbf16, #tpu.memory_space<vmem>>, %arg7: memref<1x32xf32, #tpu.memory_space<vmem>>, %arg8: memref<8x16xbf16, #tpu.memory_space<vmem>>, %arg9: memref<32x128xbf16, #tpu.memory_space<vmem>>, %arg10: memref<32x128xbf16, #tpu.memory_space<vmem>>, %arg11: memref<1x128xf32, #tpu.memory_space<vmem>>, %arg12: memref<8x128xf32, #tpu.memory_space<vmem>>) attributes {dimension_semantics = [#tpu.dimension_semantics<arbitrary>], iteration_bounds = array<i64: 1>, scalar_prefetch = 0 : i64, scratch_operands = 0 : i64, tpu.core_type = #tpu.core_type<tc>, window_params = [{pipeline_mode = #tpu.pipeline_mode<synchronous>, transform_indices = @transform_0, window_bounds = array<i64: 64, 16>}, {pipeline_mode = #tpu.pipeline_mode<synchronous>, transform_indices = @transform_1, window_bounds = array<i64: 32, 64>}, {pipeline_mode = #tpu.pipeline_mode<synchronous>, transform_indices = @transform_2, window_bounds = array<i64: 32, 32>}, {pipeline_mode = #tpu.pipeline_mode<synchronous>, transform_indices = @transform_3, window_bounds = array<i64: 1, 32>}, {pipeline_mode = #tpu.pipeline_mode<synchronous>, transform_indices = @transform_4, window_bounds = array<i64: 16, 32>}, {pipeline_mode = #tpu.pipeline_mode<synchronous>, transform_indices = @transform_5, window_bounds = array<i64: 64, 32>}, {pipeline_mode = #tpu.pipeline_mode<synchronous>, transform_indices = @transform_6, window_bounds = array<i64: 1, 32>}, {pipeline_mode = #tpu.pipeline_mode<synchronous>, transform_indices = @transform_7, window_bounds = array<i64: 8, 16>}, {pipeline_mode = #tpu.pipeline_mode<synchronous>, transform_indices = @transform_8, window_bounds = array<i64: 32, 128>}, {pipeline_mode = #tpu.pipeline_mode<synchronous>, transform_indices = @transform_9, window_bounds = array<i64: 32, 128>}, {pipeline_mode = #tpu.pipeline_mode<synchronous>, transform_indices = @transform_10, window_bounds = array<i64: 1, 128>}, {pipeline_mode = #tpu.pipeline_mode<synchronous>, transform_indices = @transform_11, window_bounds = array<i64: 8, 128>}]} {
    %c0 = arith.constant 0 : index
    %c0_0 = arith.constant 0 : index
    %0 = vector.load %arg1[%c0, %c0_0] : memref<64x16xbf16, #tpu.memory_space<vmem>>, vector<64x16xbf16>
    %1 = arith.extf %0 : vector<64x16xbf16> to vector<64x16xf32>
    %c0_1 = arith.constant 0 : index
    %c0_2 = arith.constant 0 : index
    %2 = vector.load %arg2[%c0_1, %c0_2] : memref<32x64xbf16, #tpu.memory_space<vmem>>, vector<32x64xbf16>
    %3 = arith.truncf %1 : vector<64x16xf32> to vector<64x16xbf16>
    %c0_3 = arith.constant 0 : index
    %c0_4 = arith.constant 0 : index
    %4 = vector.load %arg3[%c0_3, %c0_4] : memref<32x32xbf16, #tpu.memory_space<vmem>>, vector<32x32xbf16>
    %c0_5 = arith.constant 0 : index
    %c0_6 = arith.constant 0 : index
    %5 = vector.load %arg4[%c0_5, %c0_6] : memref<1x32xf32, #tpu.memory_space<vmem>>, vector<1x32xf32>
    %cst = arith.constant dense<0.000000e+00> : vector<32x16xf32>
    %6 = tpu.matmul %2, %3, %cst {dimension_numbers = #tpu.dot_dimension_numbers<[1], [0], [0], [1], [0, 0, 1, 1], [], []>} : vector<32x64xbf16>, vector<64x16xbf16>, vector<32x16xf32> -> vector<32x16xf32>
    %7 = vector.extract_strided_slice %1 {offsets = [0, 0], sizes = [32, 16], strides = [1, 1]} : vector<64x16xf32> to vector<32x16xf32>
    %8 = tpu.concatenate %7, %6 in 1 : vector<32x16xf32>, vector<32x16xf32> -> vector<32x32xf32>
    %9 = arith.truncf %8 : vector<32x32xf32> to vector<32x32xbf16>
    %cst_7 = arith.constant dense<0.000000e+00> : vector<32x32xf32>
    %10 = tpu.matmul %9, %4, %cst_7 {dimension_numbers = #tpu.dot_dimension_numbers<[1], [0], [0], [1], [0, 0, 1, 1], [], []>} : vector<32x32xbf16>, vector<32x32xbf16>, vector<32x32xf32> -> vector<32x32xf32>
    %11 = vector.broadcast %5 : vector<1x32xf32> to vector<32x32xf32>
    %12 = arith.addf %10, %11 : vector<32x32xf32>
    %cst_8 = arith.constant 0.000000e+00 : f32
    %13 = vector.broadcast %cst_8 : f32 to vector<32x32xf32>
    %14 = arith.maximumf %12, %13 : vector<32x32xf32>
    %c0_9 = arith.constant 0 : index
    %c0_10 = arith.constant 0 : index
    %15 = vector.load %arg5[%c0_9, %c0_10] : memref<16x32xbf16, #tpu.memory_space<vmem>>, vector<16x32xbf16>
    %16 = arith.truncf %14 : vector<32x32xf32> to vector<32x32xbf16>
    %c0_11 = arith.constant 0 : index
    %c0_12 = arith.constant 0 : index
    %17 = vector.load %arg6[%c0_11, %c0_12] : memref<64x32xbf16, #tpu.memory_space<vmem>>, vector<64x32xbf16>
    %c0_13 = arith.constant 0 : index
    %c0_14 = arith.constant 0 : index
    %18 = vector.load %arg7[%c0_13, %c0_14] : memref<1x32xf32, #tpu.memory_space<vmem>>, vector<1x32xf32>
    %cst_15 = arith.constant dense<0.000000e+00> : vector<16x32xf32>
    %19 = tpu.matmul %15, %16, %cst_15 {dimension_numbers = #tpu.dot_dimension_numbers<[1], [0], [0], [1], [0, 0, 1, 1], [], []>} : vector<16x32xbf16>, vector<32x32xbf16>, vector<16x32xf32> -> vector<16x32xf32>
    %20 = vector.extract_strided_slice %14 {offsets = [0, 0], sizes = [16, 32], strides = [1, 1]} : vector<32x32xf32> to vector<16x32xf32>
    %21 = tpu.concatenate %20, %19 in 1 : vector<16x32xf32>, vector<16x32xf32> -> vector<16x64xf32>
    %22 = arith.truncf %21 : vector<16x64xf32> to vector<16x64xbf16>
    %cst_16 = arith.constant dense<0.000000e+00> : vector<16x32xf32>
    %23 = tpu.matmul %22, %17, %cst_16 {dimension_numbers = #tpu.dot_dimension_numbers<[1], [0], [0], [1], [0, 0, 1, 1], [], []>} : vector<16x64xbf16>, vector<64x32xbf16>, vector<16x32xf32> -> vector<16x32xf32>
    %24 = vector.broadcast %18 : vector<1x32xf32> to vector<16x32xf32>
    %25 = arith.addf %23, %24 : vector<16x32xf32>
    %cst_17 = arith.constant 0.000000e+00 : f32
    %26 = vector.broadcast %cst_17 : f32 to vector<16x32xf32>
    %27 = arith.maximumf %25, %26 : vector<16x32xf32>
    %c0_18 = arith.constant 0 : index
    %c0_19 = arith.constant 0 : index
    %28 = vector.load %arg8[%c0_18, %c0_19] : memref<8x16xbf16, #tpu.memory_space<vmem>>, vector<8x16xbf16>
    %29 = arith.truncf %27 : vector<16x32xf32> to vector<16x32xbf16>
    %c0_20 = arith.constant 0 : index
    %c0_21 = arith.constant 0 : index
    %30 = vector.load %arg9[%c0_20, %c0_21] : memref<32x128xbf16, #tpu.memory_space<vmem>>, vector<32x128xbf16>
    %c0_22 = arith.constant 0 : index
    %c0_23 = arith.constant 0 : index
    %31 = vector.load %arg10[%c0_22, %c0_23] : memref<32x128xbf16, #tpu.memory_space<vmem>>, vector<32x128xbf16>
    %c0_24 = arith.constant 0 : index
    %c0_25 = arith.constant 0 : index
    %32 = vector.load %arg11[%c0_24, %c0_25] : memref<1x128xf32, #tpu.memory_space<vmem>>, vector<1x128xf32>
    %cst_26 = arith.constant dense<0.000000e+00> : vector<16x128xf32>
    %33 = tpu.matmul %29, %31, %cst_26 {dimension_numbers = #tpu.dot_dimension_numbers<[1], [0], [0], [1], [0, 0, 1, 1], [], []>} : vector<16x32xbf16>, vector<32x128xbf16>, vector<16x128xf32> -> vector<16x128xf32>
    %34 = arith.truncf %33 : vector<16x128xf32> to vector<16x128xbf16>
    %35 = vector.extract_strided_slice %29 {offsets = [0, 0], sizes = [8, 32], strides = [1, 1]} : vector<16x32xbf16> to vector<8x32xbf16>
    %cst_27 = arith.constant dense<0.000000e+00> : vector<8x128xf32>
    %36 = tpu.matmul %35, %30, %cst_27 {dimension_numbers = #tpu.dot_dimension_numbers<[1], [0], [0], [1], [0, 0, 1, 1], [], []>} : vector<8x32xbf16>, vector<32x128xbf16>, vector<8x128xf32> -> vector<8x128xf32>
    %cst_28 = arith.constant dense<0.000000e+00> : vector<8x128xf32>
    %37 = tpu.matmul %28, %34, %cst_28 {dimension_numbers = #tpu.dot_dimension_numbers<[1], [0], [0], [1], [0, 0, 1, 1], [], []>} : vector<8x16xbf16>, vector<16x128xbf16>, vector<8x128xf32> -> vector<8x128xf32>
    %38 = arith.addf %36, %37 : vector<8x128xf32>
    %39 = vector.broadcast %32 : vector<1x128xf32> to vector<8x128xf32>
    %40 = arith.addf %38, %39 : vector<8x128xf32>
    %c0_29 = arith.constant 0 : index
    %c0_30 = arith.constant 0 : index
    %41 = vector.load %arg12[%c0_29, %c0_30] : memref<8x128xf32, #tpu.memory_space<vmem>>, vector<8x128xf32>
    tpu.vector_store %arg12[%c0_29, %c0_30], %40 {strides = array<i32>} : memref<8x128xf32, #tpu.memory_space<vmem>>, vector<8x128xf32>,
    return
  }
  func.func @transform_0(%arg0: i32) -> (i32, i32) {
    %c0_i32 = arith.constant 0 : i32
    %c0_i32_0 = arith.constant 0 : i32
    %c0_i32_1 = arith.constant 0 : i32
    return %c0_i32, %c0_i32_0 : i32, i32
  }
  func.func @transform_1(%arg0: i32) -> (i32, i32) {
    %c0_i32 = arith.constant 0 : i32
    %c0_i32_0 = arith.constant 0 : i32
    %c0_i32_1 = arith.constant 0 : i32
    return %c0_i32, %c0_i32_0 : i32, i32
  }
  func.func @transform_2(%arg0: i32) -> (i32, i32) {
    %c0_i32 = arith.constant 0 : i32
    %c0_i32_0 = arith.constant 0 : i32
    %c0_i32_1 = arith.constant 0 : i32
    return %c0_i32, %c0_i32_0 : i32, i32
  }
  func.func @transform_3(%arg0: i32) -> (i32, i32) {
    %c0_i32 = arith.constant 0 : i32
    %c0_i32_0 = arith.constant 0 : i32
    %c0_i32_1 = arith.constant 0 : i32
    return %c0_i32, %c0_i32_0 : i32, i32
  }
  func.func @transform_4(%arg0: i32) -> (i32, i32) {
    %c0_i32 = arith.constant 0 : i32
    %c0_i32_0 = arith.constant 0 : i32
    %c0_i32_1 = arith.constant 0 : i32
    return %c0_i32, %c0_i32_0 : i32, i32
  }
  func.func @transform_5(%arg0: i32) -> (i32, i32) {
    %c0_i32 = arith.constant 0 : i32
    %c0_i32_0 = arith.constant 0 : i32
    %c0_i32_1 = arith.constant 0 : i32
    return %c0_i32, %c0_i32_0 : i32, i32
  }
  func.func @transform_6(%arg0: i32) -> (i32, i32) {
    %c0_i32 = arith.constant 0 : i32
    %c0_i32_0 = arith.constant 0 : i32
    %c0_i32_1 = arith.constant 0 : i32
    return %c0_i32, %c0_i32_0 : i32, i32
  }
  func.func @transform_7(%arg0: i32) -> (i32, i32) {
    %c0_i32 = arith.constant 0 : i32
    %c0_i32_0 = arith.constant 0 : i32
    %c0_i32_1 = arith.constant 0 : i32
    return %c0_i32, %c0_i32_0 : i32, i32
  }
  func.func @transform_8(%arg0: i32) -> (i32, i32) {
    %c0_i32 = arith.constant 0 : i32
    %c0_i32_0 = arith.constant 0 : i32
    %c0_i32_1 = arith.constant 0 : i32
    return %c0_i32, %c0_i32_0 : i32, i32
  }
  func.func @transform_9(%arg0: i32) -> (i32, i32) {
    %c0_i32 = arith.constant 0 : i32
    %c0_i32_0 = arith.constant 0 : i32
    %c0_i32_1 = arith.constant 0 : i32
    return %c0_i32, %c0_i32_0 : i32, i32
  }
  func.func @transform_10(%arg0: i32) -> (i32, i32) {
    %c0_i32 = arith.constant 0 : i32
    %c0_i32_0 = arith.constant 0 : i32
    %c0_i32_1 = arith.constant 0 : i32
    return %c0_i32, %c0_i32_0 : i32, i32
  }
  func.func @transform_11(%arg0: i32) -> (i32, i32) {
    %c0_i32 = arith.constant 0 : i32
    %c0_i32_0 = arith.constant 0 : i32
    %c0_i32_1 = arith.constant 0 : i32
    return %c0_i32, %c0_i32_0 : i32, i32
  }
}

</mosaic_0001>

<bundles_post_ra>
// kernel: tpu_custom_call.1
= control target key start
LH: loop header
LB: loop body
LE: loop exit
PB: predicated region body
PF: predicated region fallthrough
CT: control target
= control target key end

     0   :  { %16 = vsyncpa [#allocation3], 0  ;;  %s727_s0 = inlined_call_operand.vmem [shape: bf16[64,16], index: 0, kind: input, shape index: {}]   ;;  %s728_s1 = inlined_call_operand.vmem [shape: bf16[32,64], index: 1, kind: input, shape index: {}]   ;;  %s729_s2 = inlined_call_operand.vmem [shape: bf16[32,32], index: 2, kind: input, shape index: {}]   ;;  %s730_s3 = inlined_call_operand.hbm [shape: f32[1,32], index: 3, kind: input, shape index: {}]   ;;  %s731_s4 = inlined_call_operand.vmem [shape: bf16[16,32], index: 4, kind: input, shape index: {}]   ;;  %s732_s5 = inlined_call_operand.vmem [shape: bf16[64,32], index: 5, kind: input, shape index: {}]   ;;  %s733_s6 = inlined_call_operand.vmem [shape: f32[1,32], index: 6, kind: input, shape index: {}]   ;;  %s734_s7 = inlined_call_operand.vmem [shape: bf16[8,16], index: 7, kind: input, shape index: {}]   ;;  %s735_s8 = inlined_call_operand.vmem [shape: bf16[32,128], index: 8, kind: input, shape index: {}]   ;;  %s736_s9 = inlined_call_operand.vmem [shape: bf16[32,128], index: 9, kind: input, shape index: {}]   ;;  %s737_s10 = inlined_call_operand.vmem [shape: f32[1,128], index: 10, kind: input, shape index: {}]   ;;  %s738_s11 = inlined_call_operand.hbm [shape: f32[8,128], index: 11, kind: output, shape index: {}]  }
   0x1   :  { %17 = vsyncpa [#allocation4], 0  ;;  %s29_s19 = sshll.u32 %s730_s3, 4  ;;  %s576_s20 = smov [#allocation2]   ;;  %s30_s19 = int_to_ptr.hbm [resolvable:$true] %s29_s19 }
   0x2   :  { %s31_s21 = sshll.u32 %s576_s20, 4  ;;  %s32_s21 = int_to_ptr.vmem [resolvable:$true] %s31_s21 }
   0x3   :  { %34 = dma.hbm_to_vmem [thread:$0]  %s30_s19, 16, %s32_s21, [#allocation3]  }
   0x4   :  { %572 = dma.done.wait [#allocation3], 16  }
   0x5   :  { %573 = vsyncadd [#allocation3], 4294967280  ;;  %v488_v0 = vld [vmem:[%s727_s0 + $0x18] sm:$0xff]  ;;  %v487_v1 = vld [vmem:[%s727_s0 + $0x10] sm:$0xff]  ;;  %vm109_vm0 = vcmask 523264   ;;  %s577_s16 = smov 16  }
   0x6   :  { %120 = vmatpush.bf16.msra.mxu0 %v488_v0  ;;  %v486_v2 = vld [vmem:[%s727_s0 + $0x8] sm:$0xff]  ;;  %v485_v3 = vld [vmem:[%s727_s0] sm:$0xff]  ;;  %vm151_vm1 = vcmask 130048   ;;  %vm173_vm2 = vcmask 261120   ;;  %v497_v48 = vld [vmem:[%s732_s5 + $0x18] sm:$0xff]  ;;  %s579_s19 = smov [#allocation5]  }
   0x7   :  { %v489_v4 = vld [vmem:[%s728_s1] sm:$0xff]  ;;  %v490_v5 = vld [vmem:[%s728_s1 + $0x8] sm:$0xff]  ;;  %283 = vmatpush.bf16.msra.mxu3 %v497_v48  ;;  %v496_v49 = vld [vmem:[%s732_s5 + $0x10] sm:$0xff]  ;;  %s398_s21 = sshll.u32 %s738_s11, 4  ;;  %s399_s21 = int_to_ptr.hbm [resolvable:$true] %s398_s21 }
   0x8   :  { %v492_v6 = vld [vmem:[%s729_s2 + $0x8] sm:$0xff]  ;;  %v491_v13 = vld [vmem:[%s729_s2] sm:$0xff]  ;;  %s396_s2 = sshll.u32 %s579_s19, 4  ;;  %s397_s2 = int_to_ptr.vmem [resolvable:$true] %s396_s2 }
   0x9   :  { %186 = vmatpush.bf16.msra.mxu1 %v492_v6  ;;  %v54_v14 = vld [vmem:[%s727_s0] sm:$0xff]   ;;  %v56_v23 = vld [vmem:[%s727_s0 + $0x8] sm:$0xff]  }
   0xa   :  { %121 = vmatpush.bf16.msra.mxu0 %v487_v1  ;;  %v62_v15 = vunpack.c.l.bf16 %v54_v14  ;;  %v63_v16 = vunpack.c.h.bf16 %v54_v14  ;;  %v64_v24 = vunpack.c.l.bf16 %v56_v23  ;;  %v65_v25 = vunpack.c.h.bf16 %v56_v23  ;;  %v521_v35 = vld [vmem:[#allocation2] ss:$0 sm:$0xff]  ;;  %v495_v50 = vld [vmem:[%s732_s5 + $0x8] sm:$0xff] }
   0xb   :  { %v493_v47 = vld [vmem:[%s731_s4] sm:$0xff]  ;;  %284 = vmatpush.bf16.msra.mxu3 %v496_v49  ;;  %s578_s4 = smov 32   ;;  %v499_v61 = vld [vmem:[%s735_s8 + $0x8] sm:$0xff] }
   0xc   :  { %v494_v54 = vld [vmem:[%s732_s5] sm:$0xff]  ;;  %v501_v63 = vld [vmem:[%s736_s9 + $0x8] sm:$0xff] }
   0xd   :  { %187 = vmatpush.bf16.msra.mxu1 %v491_v13  ;;  %v498_v62 = vld [vmem:[%s735_s8] sm:$0xff] }
   0xe   :  { %122 = vmatpush.bf16.msra.mxu0 %v486_v2  ;;  %v500_v0 = vld [vmem:[%s736_s9] sm:$0xff] }
   0xf   :  { %285 = vmatpush.bf16.msra.mxu3 %v495_v50  ;;  %v522_v1 = vld [vmem:[%s733_s6] ss:$0 sm:$0xff] }
  0x11   :  { %379 = vmatpush.bf16.msrb.mxu1 %v499_v61 }
  0x12   :  { %123 = vmatpush.bf16.msra.mxu0 %v485_v3 }
  0x13   :  { %286 = vmatpush.bf16.msra.mxu3 %v494_v54 }
  0x15   :  { %432 = vmatmul.msk.bf16.vlgmr.msra.gmra.mxu0 %vm109_vm0, %v489_v4  ;;  %380 = vmatpush.bf16.msrb.mxu1 %v498_v62 }
  0x25   :  { %433 = vmatmul.msk.bf16.gmra.mxu0 %vm109_vm0, %v490_v5 }
  0x92   :  { %v125_v7 = vpop.f32.mrf.mxu0 }
  0x9a   :  { %v127_v8 = vpop.f32.mrf.mxu0 }
  0x9b   :  { %v506_v9 = vpack.i.bf16 %v127_v8, %v125_v7 }
  0x9d   :  { %507 = vrot.lane.b32.xlu0 %v506_v9, %s577_s16 }
  0xa2   :  { %v130_v10 = vpop.f32.mrf.mxu0 }
  0xaa   :  { %v132_v11 = vpop.f32.mrf.mxu0 }
  0xab   :  { %v511_v12 = vpack.i.bf16 %v132_v11, %v130_v10 }
  0xad   :  { %512 = vrot.lane.b32.xlu0 %v511_v12, %s577_s16 }
 0x10f   :  { %v508_v17 = vpop.permute.xlu0 %507 }
 0x110   :  { %v510_v18 = vunpack.i.h.bf16 %v508_v17  ;;  %v509_v19 = vunpack.i.l.bf16 %v508_v17 }
 0x112   :  { %v152_v20 = vsel %vm151_vm1, %v62_v15, %v509_v19  ;;  %v153_v21 = vsel %vm151_vm1, %v63_v16, %v510_v18  ;;  %v295_v18 = vld [vmem:[%s734_s7] sm:$0xf] }
 0x113   :  { %v156_v22 = vpack.c.bf16 %v153_v21, %v152_v20  ;;  %v523_v19 = vld [vmem:[%s737_s10] ss:$0 sm:$0xff] }
 0x115   :  { %442 = vmatmul.msk.bf16.vlgmr.msra.gmra.mxu1 %vm173_vm2, %v156_v22 }
 0x11f   :  { %v513_v26 = vpop.permute.xlu0 %512 }
 0x120   :  { %v515_v27 = vunpack.i.h.bf16 %v513_v26  ;;  %v514_v28 = vunpack.i.l.bf16 %v513_v26 }
 0x122   :  { %v154_v29 = vsel %vm151_vm1, %v64_v24, %v514_v28  ;;  %v155_v30 = vsel %vm151_vm1, %v65_v25, %v515_v27 }
 0x123   :  { %v157_v31 = vpack.c.bf16 %v155_v30, %v154_v29 }
 0x125   :  { %443 = vmatmul.msk.bf16.gmra.mxu1 %vm173_vm2, %v157_v31 }
 0x192   :  { %v189_v32 = vpop.f32.mrf.mxu1 }
 0x193   :  { %v190_v40 = vadd.f32 %v521_v35, %v189_v32 }
 0x195   :  { %v199_v45 = vmax.f32 %v190_v40, 0.0 }
 0x19a   :  { %v191_v33 = vpop.f32.mrf.mxu1 }
 0x19b   :  { %v192_v38 = vadd.f32 %v521_v35, %v191_v33 }
 0x19d   :  { %v200_v43 = vmax.f32 %v192_v38, 0.0 }
 0x19f   :  { %v205_v46 = vpack.c.bf16 %v200_v43, %v199_v45 }
 0x1a2   :  { %v194_v34 = vpop.f32.mrf.mxu1 }
 0x1a3   :  { %v195_v36 = vadd.f32 %v521_v35, %v194_v34 }
 0x1a5   :  { %v201_v41 = vmax.f32 %v195_v36, 0.0 }
 0x1aa   :  { %v196_v37 = vpop.f32.mrf.mxu1 }
 0x1ab   :  { %v197_v39 = vadd.f32 %v521_v35, %v196_v37 }
 0x1ad   :  { %v202_v42 = vmax.f32 %v197_v39, 0.0 }
 0x1af   :  { %v206_v44 = vpack.c.bf16 %v202_v42, %v201_v41 }
 0x1b1   :  { %230 = vmatpush.bf16.msra.mxu2 %v206_v44 }
 0x1b5   :  { %231 = vmatpush.bf16.msra.mxu2 %v205_v46 }
 0x1b8   :  { %448 = vmatmul.msk.bf16.vlgmr.msra.gmra.mxu2 %vm173_vm2, %v493_v47 }
 0x1b9   :  { %333 = vmatpush.bf16.msrb.mxu2 %v501_v63 }
 0x1bd   :  { %334 = vmatpush.bf16.msrb.mxu2 %v500_v0 }
 0x23b   :  { %v233_v51 = vpop.f32.mrf.mxu2 }
 0x243   :  { %v235_v52 = vpop.f32.mrf.mxu2 }
 0x244   :  { %v516_v53 = vpack.i.bf16 %v235_v52, %v233_v51 }
 0x246   :  { %517 = vrot.lane.b32.xlu1 %v516_v53, %s578_s4 }
 0x2b8   :  { %v518_v55 = vpop.permute.xlu1 %517 }
 0x2b9   :  { %v520_v56 = vunpack.i.h.bf16 %v518_v55  ;;  %v519_v57 = vunpack.i.l.bf16 %v518_v55 }
 0x2bb   :  { %v246_v58 = vsel %vm173_vm2, %v199_v45, %v519_v57  ;;  %v247_v59 = vsel %vm173_vm2, %v200_v43, %v520_v56 }
 0x2bc   :  { %v248_v60 = vpack.c.bf16 %v247_v59, %v246_v58 }
 0x2be   :  { %465 = vmatmul.msk.bf16.vlgmr.msra.gmra.mxu3 %vm109_vm0, %v248_v60 }
 0x341   :  { %v288_v2 = vpop.f32.mrf.mxu3 }
 0x342   :  { %v289_v3 = vadd.f32 %v522_v1, %v288_v2 }
 0x344   :  { %v293_v4 = vmax.f32 %v289_v3, 0.0 }
 0x346   :  { %v296_v5 = vpack.c.bf16 %v293_v4, %v293_v4 }
 0x348   :  { %484 = vmatmul.msk.bf16.vlgmr.msrb.gmra.mxu1 %vm173_vm2, %v296_v5  ;;  %v309_v10 = vunpack.c.l.b16 %v296_v5 }
 0x349   :  { %v290_v6 = vpop.f32.mrf.mxu3 }
 0x34a   :  { %v291_v7 = vadd.f32 %v522_v1, %v290_v6 }
 0x34c   :  { %v294_v8 = vmax.f32 %v291_v7, 0.0 }
 0x34e   :  { %v297_v9 = vpack.c.bf16 %v294_v8, %v294_v8 }
 0x350   :  { %v310_v11 = vunpack.c.l.b16 %v297_v9 }
 0x352   :  { %v311_v12 = vpack.c.b16 %v310_v11, %v309_v10 }
 0x354   :  { %474 = vmatmul.msk.bf16.vlgmr.msrb.gmra.mxu2 %vm173_vm2, %v311_v12 }
 0x3c5   :  { %v382_v13 = vpop.f32.mrf.mxu1 }
 0x3cd   :  { %v384_v14 = vpop.f32.mrf.mxu1 }
 0x3d7   :  { %v336_v15 = vpop.f32.mrf.mxu2 }
 0x3df   :  { %v338_v16 = vpop.f32.mrf.mxu2 }
 0x3e0   :  { %v341_v17 = vpack.c.bf16 %v338_v16, %v336_v15 }
 0x3e2   :  { %352 = vmatpush.bf16.msrb.mxu3 %v341_v17 }
 0x3e5   :  { %475 = vmatmul.msk.bf16.vlgmr.msrb.gmra.mxu3 %vm151_vm1, %v295_v18 }
 0x468   :  { %v354_v20 = vpop.f32.mrf.mxu3 }
 0x469   :  { %v383_v21 = vadd.f32 %v382_v13, %v354_v20 }
 0x46b   :  { %v389_v22 = vadd.f32 %v523_v19, %v383_v21 }
 0x46d   :  { %390 = vst [vmem:[#allocation5] sm:$0xff] %v389_v22 }
 0x46e   :  { %401 = dma.vmem_to_hbm [thread:$0]  %s397_s2, 128, %s399_s21, [#allocation4]  }
 0x470   :  { %v356_v23 = vpop.f32.mrf.mxu3 }
 0x471   :  { %574 = dma.done.wait [#allocation4], 128  }
 0x472   :  { %575 = vsyncadd [#allocation4], 4294967168 }
 0x473   :  { %406 = vsyncpa [#allocation3], 1 }
 0x474   :  { %407 = vsyncpa [#allocation4], 1 }

</bundles_post_ra>
